<compile_context>
chip_gen: v7x
topology: tpu7x:2x2x1
jax: 0.10.0
libtpu: 0.0.40
codegen_flags: <defaults>
</compile_context>

<pallas_src>
import jax
import jax.numpy as jnp
import numpy as np
from jax.experimental import pallas as pl
from jax.experimental.pallas import tpu as pltpu

# Label set of torchaudio.pipelines.WAV2VEC2_ASR_BASE_960H (29 symbols, blank='-')
LABELS = ('-', '|', 'E', 'T', 'A', 'O', 'N', 'I', 'H', 'S', 'R', 'D', 'L', 'U',
          'M', 'W', 'C', 'F', 'G', 'Y', 'P', 'B', 'V', 'K', "'", 'X', 'J', 'Q', 'Z')
BLANK = 0
KEEP_BIT = 1 << 16      # packed output: low 16 bits = argmax idx, bit 16 = keep flag


def ctc_greedy_kernel(em_ref, out_ref, carry_ref):
    """em_ref: (C, tt) logits -> out_ref: (1, tt) int32 = idx + keep*KEEP_BIT.

    carry_ref: (1,) int32 SMEM scalar holding the previous tile's last argmax
    so consecutive-dedup stays exact across grid/tile boundaries (requires the
    time grid axis to be "arbitrary", i.e. sequential).
    """
    em = em_ref[...]
    if em.dtype not in (jnp.float32, jnp.bfloat16):
        em = em.astype(jnp.float32)          # keep bf16 compute on v6e/v7x; f32 otherwise
    C, tt = em.shape                         # C == 29 full extent (pads to 32 sublanes)

    # argmax over classes = sublane reduction (first occurrence on ties)
    cls = jax.lax.broadcasted_iota(jnp.int32, (C, tt), 0)
    mx = jnp.max(em, axis=0, keepdims=True)                              # (1, tt)
    idx = jnp.min(jnp.where(em == mx, cls, C), axis=0, keepdims=True)    # (1, tt) int32

    # initialize the cross-tile carry once: "previous idx" = -1 never matches
    @pl.when(pl.program_id(0) == 0)
    def _():
        carry_ref[0] = jnp.int32(-1)

    prev_last = carry_ref[0]                       # previous tile's final argmax (or -1)
    rolled = pltpu.roll(idx, shift=1, axis=1)      # rolled[0, 0] == idx[0, tt-1]
    lane = jax.lax.broadcasted_iota(jnp.int32, (1, tt), 1)
    prev = jnp.where(lane == 0, prev_last, rolled)  # previous-timestep argmax per lane
    carry_ref[0] = rolled[0, 0]                    # becomes "previous tile" next step

    keep = jnp.logical_and(idx != prev, idx != BLANK).astype(jnp.int32)
    out_ref[...] = idx + keep * KEEP_BIT


def ctc_greedy_decode(emission, max_tile_t=8192):
    """emission: (B, T, C) logits (float32 or bfloat16), PyTorch convention.

    Decodes batch 0 (the module only ever decodes final_emission[0]).
    Returns (idx[T] int32, keep[T] bool) produced by the Pallas kernel.
    """
    em0 = emission[0]                       # (T, C)
    T, C = em0.shape
    em_t = em0.T                            # (C, T): time on the lane axis

    if T <= max_tile_t:
        tt = T                              # full extent: any T is legal on the lane dim
        nt = 1
    else:
        assert max_tile_t % 128 == 0, "time tile must be lane-aligned (multiple of 128)"
        tt = max_tile_t
        nt = pl.cdiv(T, tt)

    packed = pl.pallas_call(
        ctc_greedy_kernel,
        out_shape=jax.ShapeDtypeStruct((1, T), jnp.int32),
        grid_spec=pltpu.PrefetchScalarGridSpec(
            num_scalar_prefetch=0,
            grid=(nt,),
            in_specs=[pl.BlockSpec((C, tt), lambda i: (0, i))],
            out_specs=pl.BlockSpec((1, tt), lambda i: (0, i)),
            scratch_shapes=[pltpu.SMEM((1,), jnp.int32)],
        ),
        compiler_params=pltpu.CompilerParams(
            dimension_semantics=("arbitrary",)),   # sequential: SMEM carry across tiles
    )(em_t)

    packed = packed[0]                      # (T,)
    idx = packed & 0xFFFF
    keep = (packed >> 16).astype(bool)
    return idx, keep


if __name__ == "__main__":
    # TODO(synk): torchaudio file loading / resampling and the wav2vec2 acoustic
    # model have no Pallas equivalent here; the emission matrix the decoder
    # consumes is synthesized deterministically instead.
    key = jax.random.PRNGKey(0)
    B, T, C = 2, 256, len(LABELS)                 # small shapes: batch=2, seq=256, classes=29
    emission = jax.random.normal(key, (B, T, C), dtype=jnp.float32)
    # Force a repeated argmax spanning the t=128 tile boundary (exercises the
    # cross-tile carry) and an explicit blank frame (exercises blank masking).
    emission = emission.at[0, 127].set(emission[0, 128])
    emission = emission.at[0, 5, BLANK].set(50.0)

    # ---- reference (plain JAX / numpy, mirrors the PyTorch forward) ----
    ref_idx = np.asarray(jnp.argmax(emission[0], axis=-1)).astype(np.int32)
    ref_tokens, prev = [], None
    for i in ref_idx.tolist():                    # unique_consecutive
        if i != prev:
            ref_tokens.append(i)
        prev = i
    ref_tokens = [i for i in ref_tokens if i != BLANK]

    tokens = []
    # Exercise both the single-tile path and the multi-tile cross-boundary carry.
    for max_tile in (8192, 128):
        idx, keep = ctc_greedy_decode(emission, max_tile_t=max_tile)
        jax.block_until_ready((idx, keep))
        idx_np = np.asarray(idx)
        keep_np = np.asarray(keep)
        assert np.array_equal(idx_np, ref_idx), "argmax mismatch"
        tokens = idx_np[keep_np].tolist()         # kernel-produced mask compaction
        assert tokens == ref_tokens, "dedup/blank mask mismatch"

    transcript = ''.join(LABELS[i] for i in tokens)   # host-side string join
    print("KERNEL_OK")
</pallas_src>

<mosaic_0001>
module attributes {stable_mosaic.version = 11 : i64} {
  func.func @ctc_greedy_kernel(%arg0: i32, %arg1: memref<29x256xf32, #tpu.memory_space<vmem>>, %arg2: memref<1x256xi32, #tpu.memory_space<vmem>>, %arg3: memref<1xi32, #tpu.memory_space<smem>>) attributes {dimension_semantics = [#tpu.dimension_semantics<arbitrary>], iteration_bounds = array<i64: 1>, scalar_prefetch = 0 : i64, scratch_operands = 1 : i64, tpu.core_type = #tpu.core_type<tc>, window_params = [{transform_indices = @transform_0, window_bounds = array<i64: 29, 256>}, {transform_indices = @transform_1, window_bounds = array<i64: 1, 256>}]} {
    %c0 = arith.constant 0 : index
    %c0_0 = arith.constant 0 : index
    %0 = vector.load %arg1[%c0, %c0_0] : memref<29x256xf32, #tpu.memory_space<vmem>>, vector<29x256xf32>
    %1 = tpu.iota {dimensions = array<i32: 0>} : vector<29x256xi32>
    %cst = arith.constant dense<0xFF800000> : vector<256xf32>
    %2 = vector.multi_reduction <maximumf>, %0, %cst [0] : vector<29x256xf32> to vector<256xf32>
    %3 = vector.shape_cast %2 : vector<256xf32> to vector<1x256xf32>
    %4 = vector.broadcast %3 : vector<1x256xf32> to vector<29x256xf32>
    %5 = arith.cmpf oeq, %0, %4 : vector<29x256xf32>
    %c29_i32 = arith.constant 29 : i32
    %6 = vector.broadcast %c29_i32 : i32 to vector<29x256xi32>
    %7 = arith.select %5, %1, %6 : vector<29x256xi1>, vector<29x256xi32>
    %cst_1 = arith.constant dense<2147483647> : vector<256xi32>
    %8 = vector.multi_reduction <minsi>, %7, %cst_1 [0] : vector<29x256xi32> to vector<256xi32>
    %9 = vector.shape_cast %8 : vector<256xi32> to vector<1x256xi32>
    %c0_i32 = arith.constant 0 : i32
    %10 = arith.cmpi eq, %arg0, %c0_i32 : i32
    %11 = arith.extui %10 : i1 to i32
    %c0_i32_2 = arith.constant 0 : i32
    %12 = arith.cmpi ne, %11, %c0_i32_2 : i32
    scf.if %12 {
      %c-1_i32 = arith.constant -1 : i32
      %c0_9 = arith.constant 0 : index
      %32 = memref.load %arg3[%c0_9] : memref<1xi32, #tpu.memory_space<smem>>
      memref.store %c-1_i32, %arg3[%c0_9] : memref<1xi32, #tpu.memory_space<smem>>
    } else {
    }
    %c0_3 = arith.constant 0 : index
    %13 = memref.load %arg3[%c0_3] : memref<1xi32, #tpu.memory_space<smem>>
    %c1_i32 = arith.constant 1 : i32
    %14 = tpu.dynamic_rotate %9 by %c1_i32 dim 1 : vector<1x256xi32>, i32 -> vector<1x256xi32>
    %15 = tpu.iota {dimensions = array<i32: 1>} : vector<1x256xi32>
    %c0_i32_4 = arith.constant 0 : i32
    %16 = vector.broadcast %c0_i32_4 : i32 to vector<1x256xi32>
    %17 = arith.cmpi eq, %15, %16 : vector<1x256xi32>
    %18 = vector.broadcast %13 : i32 to vector<1x256xi32>
    %19 = arith.select %17, %18, %14 : vector<1x256xi1>, vector<1x256xi32>
    %20 = vector.extract_strided_slice %14 {offsets = [0, 0], sizes = [1, 1], strides = [1, 1]} : vector<1x256xi32> to vector<1x1xi32>
    %21 = vector.extract %20[0, 0] : i32 from vector<1x1xi32>
    %c0_5 = arith.constant 0 : index
    %22 = memref.load %arg3[%c0_5] : memref<1xi32, #tpu.memory_space<smem>>
    memref.store %21, %arg3[%c0_5] : memref<1xi32, #tpu.memory_space<smem>>
    %23 = arith.cmpi ne, %9, %19 : vector<1x256xi32>
    %c0_i32_6 = arith.constant 0 : i32
    %24 = vector.broadcast %c0_i32_6 : i32 to vector<1x256xi32>
    %25 = arith.cmpi ne, %9, %24 : vector<1x256xi32>
    %26 = arith.andi %23, %25 : vector<1x256xi1>
    %27 = arith.extui %26 : vector<1x256xi1> to vector<1x256xi32>
    %c65536_i32 = arith.constant 65536 : i32
    %28 = vector.broadcast %c65536_i32 : i32 to vector<1x256xi32>
    %29 = arith.muli %27, %28 : vector<1x256xi32>
    %30 = arith.addi %9, %29 : vector<1x256xi32>
    %c0_7 = arith.constant 0 : index
    %c0_8 = arith.constant 0 : index
    %31 = vector.load %arg2[%c0_7, %c0_8] : memref<1x256xi32, #tpu.memory_space<vmem>>, vector<1x256xi32>
    tpu.vector_store %arg2[%c0_7, %c0_8], %30 {strides = array<i32>} : memref<1x256xi32, #tpu.memory_space<vmem>>, vector<1x256xi32>,
    return
  }
  func.func @transform_0(%arg0: i32) -> (i32, i32) {
    %c0_i32 = arith.constant 0 : i32
    %c0_i32_0 = arith.constant 0 : i32
    return %c0_i32, %arg0 : i32, i32
  }
  func.func @transform_1(%arg0: i32) -> (i32, i32) {
    %c0_i32 = arith.constant 0 : i32
    %c0_i32_0 = arith.constant 0 : i32
    return %c0_i32, %arg0 : i32, i32
  }
}

</mosaic_0001>

<bundles_post_ra>
// kernel: tpu_custom_call.1
= control target key start
LH: loop header
LB: loop body
LE: loop exit
PB: predicated region body
PF: predicated region fallthrough
CT: control target
= control target key end

     0   :  { %6 = vsyncpa [#allocation4], 0  ;;  %s288_s0 = inlined_call_operand.hbm [shape: f32[29,256], index: 0, kind: input, shape index: {}]   ;;  %s289_s1 = inlined_call_operand.hbm [shape: s32[1,256], index: 1, kind: output, shape index: {}]  }
   0x1   :  { %7 = vsyncpa [#allocation5], 0  ;;  %s232_s6 = smov [#allocation3]   ;;  %s184_s10 = scalar_lea.hbm %s288_s0, 1024 }
   0x2   :  { %s13_s7 = sshll.u32 %s232_s6, 4  ;;  %p185_p0 = scmp.ne.s32.totalorder %s288_s0, %s184_s10  ;;  %s14_s7 = int_to_ptr.vmem [resolvable:$true] %s13_s7 }
   0x3   :  { %p188_p1 = scmp.lt.u32.totalorder %s184_s10, %s288_s0 }
   0x5   :  { %p190_p2 = pnand %p188_p1, %p185_p0 }
   0x7   :  { %193 = shalt.err (!%p190_p2)
}
   0x8   :  { %s194_s15 = scalar_lea.vmem %s14_s7, 1024  ;;  %p199_p4 = scmp.lt.s32.totalorder %s14_s7, %s14_s7 }
   0x9   :  { %p195_p3 = scmp.ne.s32.totalorder %s14_s7, %s194_s15  ;;  %p200_p5 = scmp.lt.s32.totalorder %s194_s15, %s194_s15 }
   0xb   :  { %p201_p6 = por %p200_p5, %p199_p4 }
   0xd   :  { %p202_p7 = pnand %p201_p6, %p195_p3 }
   0xf   :  { %205 = shalt.err (!%p202_p7)
}
  0x10   :  { %s233_s16 = smov 256   ;;  %s234_s17 = smov 16  }
  0x11   :  { %19 = dma.hbm_to_vmem [thread:$0]  %s288_s0, 1024, %s14_s7, [#allocation4], %s233_s16, %s233_s16, %s234_s17  }
  0x12   :  { %228 = dma.done.wait [#allocation4], 1024  }
  0x13   :  { %229 = vsyncadd [#allocation4], 4294966272  ;;  %vm37_vm0 = vcmask 1044480   ;;  %v23_v0 = vld [vmem:[#allocation3] sm:$0xff]  ;;  %v25_v1 = vld [vmem:[#allocation3 + $0x10] sm:$0xff]  ;;  %v31_v17 = vlaneseq  ;;  %s235_s0 = smov 1  }
  0x14   :  { %v27_v2 = vld [vmem:[#allocation3 + $0x20] sm:$0xff]  ;;  %v29_v3 = vld [vmem:[#allocation3 + $0x30] sm:$0x1f]  ;;  %v24_v5 = vld [vmem:[#allocation3 + $0x8] sm:$0xff]  ;;  %s238_s20 = smov [#allocation6]  }
  0x15   :  { %v36_v4 = vmax.f32 %v23_v0, %v27_v2  ;;  %v26_v6 = vld [vmem:[#allocation3 + $0x18] sm:$0xff]  ;;  %v38_v7 = vsel %vm37_vm0, %v29_v3, -inf  ;;  %v28_v8 = vld [vmem:[#allocation3 + $0x28] sm:$0xff]  ;;  %v264_v22 = vshrl.u32 %v31_v17, 7  ;;  %v117_v61 = vand.u32 127, %v31_v17  ;;  %s168_s21 = sshll.u32 %s238_s20, 4  ;;  %s169_s21 = int_to_ptr.vmem [resolvable:$true] %s168_s21 }
  0x16   :  { %v30_v9 = vld [vmem:[#allocation3 + $0x38] sm:$0x1f]  ;;  %v39_v10 = vmax.f32 %v25_v1, %v38_v7  ;;  %v47_v11 = vmax.f32 %v24_v5, %v28_v8  ;;  %s206_s22 = scalar_lea.vmem %s169_s21, 32  ;;  %p211_p9 = scmp.lt.s32.totalorder %s169_s21, %s169_s21 }
  0x17   :  { %v48_v12 = vsel %vm37_vm0, %v30_v9, -inf  ;;  %v33_v27 = vadd.s32 8, %v264_v22  ;;  %v34_v28 = vadd.s32 16, %v264_v22  ;;  %v35_v29 = vadd.s32 24, %v264_v22  ;;  %p207_p8 = scmp.ne.s32.totalorder %s169_s21, %s206_s22  ;;  %p212_p10 = scmp.lt.s32.totalorder %s206_s22, %s206_s22 }
  0x18   :  { %v49_v13 = vmax.f32 %v26_v6, %v48_v12  ;;  %v40_v14 = vmax.f32 %v36_v4, %v39_v10 }
  0x19   :  { %p213_p11 = por %p212_p10, %p211_p9 }
  0x1a   :  { %v50_v15 = vmax.f32 %v47_v11, %v49_v13  ;;  %v41_v16 = vrot.slane %v40_v14, 4 }
  0x1b   :  { %p214_p12 = pnand %p213_p11, %p207_p8 }
  0x1c   :  { %v51_v18 = vrot.slane %v50_v15, 4  ;;  %v42_v19 = vmax.f32 %v40_v14, %v41_v16 }
  0x1e   :  { %v52_v20 = vmax.f32 %v50_v15, %v51_v18  ;;  %v43_v21 = vrot.slane %v42_v19, 2 }
  0x20   :  { %v53_v23 = vrot.slane %v52_v20, 2  ;;  %v44_v24 = vmax.f32 %v42_v19, %v43_v21 }
  0x22   :  { %v54_v25 = vmax.f32 %v52_v20, %v53_v23  ;;  %v45_v26 = vrot.slane %v44_v24, 1 }
  0x24   :  { %v55_v30 = vrot.slane %v54_v25, 1  ;;  %v46_v31 = vmax.f32 %v44_v24, %v45_v26 }
  0x26   :  { %v56_v32 = vmax.f32 %v54_v25, %v55_v30  ;;  %vm57_vm1 = vcmp.eq.f32.partialorder %v23_v0, %v46_v31  ;;  %vm59_vm2 = vcmp.eq.f32.partialorder %v25_v1, %v46_v31  ;;  %vm61_vm3 = vcmp.eq.f32.partialorder %v27_v2, %v46_v31 }
  0x27   :  { %vm63_vm4 = vcmp.eq.f32.partialorder %v29_v3, %v46_v31  ;;  %v65_v33 = vsel %vm57_vm1, %v264_v22, 29  ;;  %v67_v34 = vsel %vm59_vm2, %v33_v27, 29  ;;  %v69_v35 = vsel %vm61_vm3, %v34_v28, 29 }
  0x28   :  { %v71_v36 = vsel %vm63_vm4, %v35_v29, 29  ;;  %vm73_vm5 = vcmp.lt.s32.totalorder %v65_v33, %v69_v35  ;;  %vm58_vm6 = vcmp.eq.f32.partialorder %v24_v5, %v56_v32  ;;  %vm60_vm7 = vcmp.eq.f32.partialorder %v26_v6, %v56_v32 }
  0x29   :  { %v75_v37 = vsel %vm37_vm0, %v71_v36, 2147483647  ;;  %v74_v38 = vsel %vm73_vm5, %v65_v33, %v69_v35  ;;  %vm62_vm9 = vcmp.eq.f32.partialorder %v28_v8, %v56_v32  ;;  %vm64_vm10 = vcmp.eq.f32.partialorder %v30_v9, %v56_v32 }
  0x2a   :  { %vm76_vm8 = vcmp.lt.s32.totalorder %v67_v34, %v75_v37  ;;  %v66_v40 = vsel %vm58_vm6, %v264_v22, 29  ;;  %v68_v41 = vsel %vm60_vm7, %v33_v27, 29  ;;  %v70_v42 = vsel %vm62_vm9, %v34_v28, 29 }
  0x2b   :  { %v77_v39 = vsel %vm76_vm8, %v67_v34, %v75_v37  ;;  %v72_v43 = vsel %vm64_vm10, %v35_v29, 29  ;;  %vm89_vm12 = vcmp.lt.s32.totalorder %v66_v40, %v70_v42  ;;  %vm118_vm5 = vcmp.lt.s32.totalorder %v117_v61, 1 }
  0x2c   :  { %vm78_vm11 = vcmp.lt.s32.totalorder %v74_v38, %v77_v39  ;;  %v90_v45 = vsel %vm89_vm12, %v66_v40, %v70_v42  ;;  %v91_v46 = vsel %vm37_vm0, %v72_v43, 2147483647  ;;  %vm122_vm6 = vcmp.eq.s32.totalorder %v117_v61, 0 }
  0x2d   :  { %v79_v44 = vsel %vm78_vm11, %v74_v38, %v77_v39  ;;  %vm92_vm13 = vcmp.lt.s32.totalorder %v68_v41, %v91_v46  ;;  %v236_v0 = vmov 1966171168   ;;  %v237_v5 = vmov 0  }
  0x2e   :  { %v80_v47 = vrot.slane %v79_v44, 4  ;;  %v93_v48 = vsel %vm92_vm13, %v68_v41, %v91_v46  ;;  %v144_v1 = vunpack.c.l.s4 %v236_v0  ;;  %vm159_vm13 = vcmp.lt.s32.totalorder %v31_v17, 256 }
  0x2f   :  { %vm94_vm15 = vcmp.lt.s32.totalorder %v90_v45, %v93_v48 }
  0x30   :  { %vm81_vm14 = vcmp.lt.s32.totalorder %v79_v44, %v80_v47  ;;  %v95_v50 = vsel %vm94_vm15, %v90_v45, %v93_v48  ;;  %v145_v7 = vunpack.c.0.s8 %v144_v1 }
  0x31   :  { %v82_v49 = vsel %vm81_vm14, %v79_v44, %v80_v47  ;;  %v96_v52 = vrot.slane %v95_v50, 4 }
  0x32   :  { %v83_v51 = vrot.slane %v82_v49, 2  ;;  %v148_v13 = vsub.s32 %v145_v7, %v264_v22 }
  0x33   :  { %vm97_vm2 = vcmp.lt.s32.totalorder %v95_v50, %v96_v52 }
  0x34   :  { %vm84_vm1 = vcmp.lt.s32.totalorder %v82_v49, %v83_v51  ;;  %v98_v54 = vsel %vm97_vm2, %v95_v50, %v96_v52 }
  0x35   :  { %v85_v53 = vsel %vm84_vm1, %v82_v49, %v83_v51  ;;  %v99_v56 = vrot.slane %v98_v54, 2 }
  0x36   :  { %v86_v55 = vrot.slane %v85_v53, 1 }
  0x37   :  { %vm100_vm4 = vcmp.lt.s32.totalorder %v98_v54, %v99_v56 }
  0x38   :  { %vm87_vm3 = vcmp.lt.s32.totalorder %v85_v53, %v86_v55  ;;  %v101_v58 = vsel %vm100_vm4, %v98_v54, %v99_v56 }
  0x39   :  { %v88_v57 = vsel %vm87_vm3, %v85_v53, %v86_v55  ;;  %v102_v59 = vrot.slane %v101_v58, 1 }
  0x3a   :  { %112 = vrot.lane.b32.xlu0 %v88_v57, %s235_s0  ;;  %vm132_vm8 = vcmp.ne.s32.totalorder %v88_v57, 0 }
  0x3b   :  { %vm103_vm0 = vcmp.lt.s32.totalorder %v101_v58, %v102_v59 }
  0x3c   :  { %v104_v60 = vsel %vm103_vm0, %v101_v58, %v102_v59 }
  0x3d   :  { %vm133_vm7 = vcmp.ne.s32.totalorder %v104_v60, 0 }
  0x3e   :  { %114 = vrot.lane.b32.xlu0 %v104_v60, %s235_s0 }
  0xac   :  { %v113_v62 = vpop.permute.xlu0 %112 }
  0xb0   :  { %v115_v63 = vpop.permute.xlu0 %114 }
  0xb1   :  { %v119_v2 = vsel %vm118_vm5, %v113_v62, %v115_v63  ;;  %v120_v3 = vsel %vm118_vm5, %v115_v63, %v113_v62 }
  0xb2   :  { %v125_v4 = vsel %vm122_vm6, 4294967295, %v120_v3  ;;  %vm131_vm9 = vcmp.ne.s32.totalorder %v104_v60, %v119_v2 }
  0xb3   :  { %vm130_vm10 = vcmp.ne.s32.totalorder %v88_v57, %v125_v4  ;;  %vm135_vm11 = vmand %vm131_vm9, %vm133_vm7 }
  0xb4   :  { %vm134_vm12 = vmand %vm130_vm10, %vm132_vm8  ;;  %v137_v6 = vsel %vm135_vm11, 1, %v237_v5 }
  0xb5   :  { %v136_v8 = vsel %vm134_vm12, 1, %v237_v5  ;;  %v139_v9 = vmul.u32 65536, %v137_v6 }
  0xb6   :  { %v138_v10 = vmul.u32 65536, %v136_v8 }
  0xb7   :  { %v141_v11 = vadd.s32 %v139_v9, %v104_v60 }
  0xb8   :  { %v140_v12 = vadd.s32 %v138_v10, %v88_v57 }
  0xba   :  { %v142_v14 = vcombine.low %v140_v12, %v141_v11 }
  0xbc   :  { %v149_v15 = vrot.slane %v142_v14, %v148_v13 }
  0xbe   :  { %v156_v16 = vrot.slane %v149_v15, %v148_v13 }
  0xc0   :  { %161 = vst.msk [vmem:[#allocation6] sm:$0x3] %vm159_vm13, %v156_v16 }
  0xc1   :  { %217 = shalt.err (!%p214_p12)
}
  0xc2   :  { %s218_s25 = scalar_lea.hbm %s289_s1, 32 }
  0xc3   :  { %p219_p13 = scmp.ne.s32.totalorder %s289_s1, %s218_s25  ;;  %p222_p0 = scmp.lt.u32.totalorder %s218_s25, %s289_s1 }
  0xc5   :  { %p224_p1 = pnand %p222_p0, %p219_p13 }
  0xc7   :  { %227 = shalt.err (!%p224_p1)
}
  0xc8   :  { %171 = dma.vmem_to_hbm [thread:$0]  %s169_s21, 32, %s289_s1, [#allocation5]  }
  0xc9   :  { %230 = dma.done.wait [#allocation5], 32  }
  0xca   :  { %231 = vsyncadd [#allocation5], 4294967264 }
  0xcb   :  { %175 = vsyncpa [#allocation4], 1 }
  0xcc   :  { %176 = vsyncpa [#allocation5], 1 }

</bundles_post_ra>
